<compile_context>
chip_gen: v5e
topology: v5e:2x2
jax: 0.10.0
libtpu: 0.0.40
codegen_flags: <defaults>
</compile_context>

<pallas_src>
import functools

import jax
import jax.numpy as jnp
from jax.experimental import pallas as pl
from jax.experimental.pallas import tpu as pltpu


def _round_up(n, m):
    return ((n + m - 1) // m) * m


def pwff_kernel(x_ref, w1_ref, b1_ref, w2_ref, b2_ref, o_ref, acc_ref, h_ref):
    # x_ref:  (tm, Hp)   tile of flattened (padded) tokens
    # w1_ref: (Hp, tp)   fc_1 weight slice (transposed Conv1d weight)
    # b1_ref: (1, tp)    fc_1 bias slice (f32)
    # w2_ref: (tp, Hp)   fc_2 weight slice (transposed Conv1d weight)
    # b2_ref: (1, Hp)    fc_2 bias (f32)
    # acc_ref:(tm, Hp)   f32 accumulator over the P (pf_dim) reduction axis
    # h_ref:  (tm, tp)   f32 scratch for the ReLU intermediate
    p = pl.program_id(1)

    @pl.when(p == 0)
    def _():
        acc_ref[...] = jnp.zeros_like(acc_ref)

    # fc_1 slice + bias + ReLU, all on the f32 accumulator path.
    h_ref[...] = jnp.maximum(
        jnp.dot(x_ref[...], w1_ref[...], preferred_element_type=jnp.float32)
        + b1_ref[...],
        0.0,
    )
    # dropout: identity in inference mode
    # fc_2 slice, accumulated in f32; single downcast before the MXU dot.
    acc_ref[...] += jnp.dot(
        h_ref[...].astype(w2_ref.dtype), w2_ref[...],
        preferred_element_type=jnp.float32,
    )

    @pl.when(p == pl.num_programs(1) - 1)
    def _():
        o_ref[...] = (acc_ref[...] + b2_ref[...]).astype(o_ref.dtype)


@functools.partial(jax.jit, static_argnames=("tm", "tp", "compute_dtype"))
def positionwise_feedforward(x, w1, b1, w2, b2, *, tm=256, tp=512,
                             compute_dtype=None):
    """x: [B, S, H]; w1: [H, P]; b1: [P]; w2: [P, H]; b2: [H] -> [B, S, H].

    tm: token tile (rows of the flattened [B*S, H] input) -- tune per shape.
    tp: pf_dim tile (reduction axis) -- bounds weight/intermediate VMEM residency.
    compute_dtype: dtype used for the MXU operands (e.g. jnp.bfloat16);
                   accumulation is always f32. Defaults to x.dtype.
    """
    B, S, H = x.shape
    P = w1.shape[1]
    M = B * S

    cdt = jnp.dtype(compute_dtype) if compute_dtype is not None else x.dtype

    # Lane-dense padding: last dims presented to the MXU / stores are x128.
    Hp = _round_up(H, 128)
    Pp = _round_up(P, 128)

    # Clamp tiles to the (padded) problem, keep sublane/lane alignment.
    tm = _round_up(min(tm, _round_up(M, 16)), 16)
    tp = _round_up(min(tp, Pp), 128)
    Pp = _round_up(Pp, tp)
    Mp = _round_up(M, tm)

    x2 = jnp.pad(x.reshape(M, H).astype(cdt), ((0, Mp - M), (0, Hp - H)))
    w1p = jnp.pad(w1.astype(cdt), ((0, Hp - H), (0, Pp - P)))
    w2p = jnp.pad(w2.astype(cdt), ((0, Pp - P), (0, Hp - H)))
    b1p = jnp.pad(b1.astype(jnp.float32), (0, Pp - P)).reshape(1, Pp)
    b2p = jnp.pad(b2.astype(jnp.float32), (0, Hp - H)).reshape(1, Hp)

    grid = (Mp // tm, Pp // tp)
    itemsize = jnp.dtype(cdt).itemsize

    cost = pl.CostEstimate(
        flops=4 * Mp * Hp * Pp,                       # two matmuls
        bytes_accessed=(
            Mp * Hp * itemsize                        # x read
            + Mp * Hp * jnp.dtype(x.dtype).itemsize   # out write
            + (w1p.size + w2p.size) * itemsize * grid[0]
            + (b1p.size + b2p.size) * 4 * grid[0]
        ),
        transcendentals=0,
    )

    out = pl.pallas_call(
        pwff_kernel,
        out_shape=jax.ShapeDtypeStruct((Mp, Hp), x.dtype),
        grid_spec=pltpu.PrefetchScalarGridSpec(
            num_scalar_prefetch=0,
            grid=grid,
            in_specs=[
                pl.BlockSpec((tm, Hp), lambda i, p: (i, 0)),   # x tile (tokens)
                pl.BlockSpec((Hp, tp), lambda i, p: (0, p)),   # W1 slice over P
                pl.BlockSpec((1, tp), lambda i, p: (0, p)),    # b1 slice
                pl.BlockSpec((tp, Hp), lambda i, p: (p, 0)),   # W2 slice over P
                pl.BlockSpec((1, Hp), lambda i, p: (0, 0)),    # b2
            ],
            out_specs=pl.BlockSpec((tm, Hp), lambda i, p: (i, 0)),
            scratch_shapes=[
                pltpu.VMEM((tm, Hp), jnp.float32),   # fc_2 accumulator
                pltpu.VMEM((tm, tp), jnp.float32),   # ReLU intermediate
            ],
        ),
        compiler_params=pltpu.CompilerParams(
            dimension_semantics=("parallel", "arbitrary"),
            vmem_limit_bytes=64 * 1024 * 1024,
        ),
        cost_estimate=cost,
    )(x2, w1p, b1p, w2p, b2p)

    return out[:M, :H].reshape(B, S, H)


if __name__ == "__main__":
    # Small shapes consistent with the module's forward.
    B, S = 2, 8
    hid_dim, pf_dim = 32, 64

    key = jax.random.PRNGKey(0)
    kx, kw1, kb1, kw2, kb2 = jax.random.split(key, 5)

    x = jax.random.normal(kx, (B, S, hid_dim), dtype=jnp.float32)

    # PyTorch Conv1d weight shape is [out, in, 1]; store the transposed [in, out]
    # form the kernel consumes.
    w1_conv = jax.random.normal(kw1, (pf_dim, hid_dim, 1), dtype=jnp.float32) * 0.1
    b1 = jax.random.normal(kb1, (pf_dim,), dtype=jnp.float32) * 0.1
    w2_conv = jax.random.normal(kw2, (hid_dim, pf_dim, 1), dtype=jnp.float32) * 0.1
    b2 = jax.random.normal(kb2, (hid_dim,), dtype=jnp.float32) * 0.1

    w1 = jnp.transpose(w1_conv[:, :, 0], (1, 0))   # [hid_dim, pf_dim]
    w2 = jnp.transpose(w2_conv[:, :, 0], (1, 0))   # [pf_dim, hid_dim]

    # Pure-JAX reference (same math as the PyTorch forward in eval mode).
    ref = jnp.maximum(jnp.einsum("bsh,hp->bsp", x, w1) + b1, 0.0)
    ref = jnp.einsum("bsp,ph->bsh", ref, w2) + b2

    # f32 compute path: exact (tight tolerance).
    out_f32 = jax.block_until_ready(positionwise_feedforward(x, w1, b1, w2, b2))
    assert out_f32.shape == (B, S, hid_dim)
    assert jnp.allclose(out_f32, ref, atol=1e-5, rtol=1e-5), "f32 mismatch vs reference"

    # bf16 compute path (MXU-friendly): f32 accumulation, loose tolerance.
    out_bf16 = jax.block_until_ready(
        positionwise_feedforward(x, w1, b1, w2, b2, compute_dtype=jnp.bfloat16))
    assert out_bf16.shape == (B, S, hid_dim)
    assert jnp.allclose(out_bf16, ref, atol=5e-2, rtol=5e-2), "bf16 mismatch vs reference"

    print("KERNEL_OK")
</pallas_src>

<mosaic_0001>
module attributes {stable_mosaic.version = 11 : i64} {
  func.func @pwff_kernel(%arg0: i32, %arg1: i32, %arg2: memref<16x128xf32, #tpu.memory_space<vmem>>, %arg3: memref<128x128xf32, #tpu.memory_space<vmem>>, %arg4: memref<1x128xf32, #tpu.memory_space<vmem>>, %arg5: memref<128x128xf32, #tpu.memory_space<vmem>>, %arg6: memref<1x128xf32, #tpu.memory_space<vmem>>, %arg7: memref<16x128xf32, #tpu.memory_space<vmem>>, %arg8: memref<16x128xf32, #tpu.memory_space<vmem>>, %arg9: memref<16x128xf32, #tpu.memory_space<vmem>>) attributes {dimension_semantics = [#tpu.dimension_semantics<parallel>, #tpu.dimension_semantics<arbitrary>], iteration_bounds = array<i64: 1, 1>, scalar_prefetch = 0 : i64, scratch_operands = 2 : i64, tpu.core_type = #tpu.core_type<tc>, window_params = [{transform_indices = @transform_0, window_bounds = array<i64: 16, 128>}, {transform_indices = @transform_1, window_bounds = array<i64: 128, 128>}, {transform_indices = @transform_2, window_bounds = array<i64: 1, 128>}, {transform_indices = @transform_3, window_bounds = array<i64: 128, 128>}, {pipeline_mode = #tpu.pipeline_mode<synchronous>, transform_indices = @transform_4, window_bounds = array<i64: 1, 128>}, {transform_indices = @transform_5, window_bounds = array<i64: 16, 128>}]} {
    %c0_i32 = arith.constant 0 : i32
    %0 = arith.cmpi eq, %arg1, %c0_i32 : i32
    %1 = arith.extui %0 : i1 to i32
    %c0_i32_0 = arith.constant 0 : i32
    %2 = arith.cmpi ne, %1, %c0_i32_0 : i32
    scf.if %2 {
      %cst_20 = arith.constant 0.000000e+00 : f32
      %21 = vector.broadcast %cst_20 : f32 to vector<16x128xf32>
      %c0_21 = arith.constant 0 : index
      %c0_22 = arith.constant 0 : index
      %22 = vector.load %arg8[%c0_21, %c0_22] : memref<16x128xf32, #tpu.memory_space<vmem>>, vector<16x128xf32>
      tpu.vector_store %arg8[%c0_21, %c0_22], %21 {strides = array<i32>} : memref<16x128xf32, #tpu.memory_space<vmem>>, vector<16x128xf32>,
    } else {
    }
    %c0 = arith.constant 0 : index
    %c0_1 = arith.constant 0 : index
    %3 = vector.load %arg2[%c0, %c0_1] : memref<16x128xf32, #tpu.memory_space<vmem>>, vector<16x128xf32>
    %c0_2 = arith.constant 0 : index
    %c0_3 = arith.constant 0 : index
    %4 = vector.load %arg3[%c0_2, %c0_3] : memref<128x128xf32, #tpu.memory_space<vmem>>, vector<128x128xf32>
    %cst = arith.constant dense<0.000000e+00> : vector<16x128xf32>
    %5 = tpu.matmul %3, %4, %cst {dimension_numbers = #tpu.dot_dimension_numbers<[1], [0], [0], [1], [0, 0, 1, 1], [], []>} : vector<16x128xf32>, vector<128x128xf32>, vector<16x128xf32> -> vector<16x128xf32>
    %c0_4 = arith.constant 0 : index
    %c0_5 = arith.constant 0 : index
    %6 = vector.load %arg4[%c0_4, %c0_5] : memref<1x128xf32, #tpu.memory_space<vmem>>, vector<1x128xf32>
    %7 = vector.broadcast %6 : vector<1x128xf32> to vector<16x128xf32>
    %8 = arith.addf %5, %7 : vector<16x128xf32>
    %cst_6 = arith.constant 0.000000e+00 : f32
    %9 = vector.broadcast %cst_6 : f32 to vector<16x128xf32>
    %10 = arith.maximumf %8, %9 : vector<16x128xf32>
    %c0_7 = arith.constant 0 : index
    %c0_8 = arith.constant 0 : index
    %11 = vector.load %arg9[%c0_7, %c0_8] : memref<16x128xf32, #tpu.memory_space<vmem>>, vector<16x128xf32>
    tpu.vector_store %arg9[%c0_7, %c0_8], %10 {strides = array<i32>} : memref<16x128xf32, #tpu.memory_space<vmem>>, vector<16x128xf32>,
    %c0_9 = arith.constant 0 : index
    %c0_10 = arith.constant 0 : index
    %12 = vector.load %arg8[%c0_9, %c0_10] : memref<16x128xf32, #tpu.memory_space<vmem>>, vector<16x128xf32>
    %c0_11 = arith.constant 0 : index
    %c0_12 = arith.constant 0 : index
    %13 = vector.load %arg9[%c0_11, %c0_12] : memref<16x128xf32, #tpu.memory_space<vmem>>, vector<16x128xf32>
    %c0_13 = arith.constant 0 : index
    %c0_14 = arith.constant 0 : index
    %14 = vector.load %arg5[%c0_13, %c0_14] : memref<128x128xf32, #tpu.memory_space<vmem>>, vector<128x128xf32>
    %cst_15 = arith.constant dense<0.000000e+00> : vector<16x128xf32>
    %15 = tpu.matmul %13, %14, %cst_15 {dimension_numbers = #tpu.dot_dimension_numbers<[1], [0], [0], [1], [0, 0, 1, 1], [], []>} : vector<16x128xf32>, vector<128x128xf32>, vector<16x128xf32> -> vector<16x128xf32>
    %16 = arith.addf %12, %15 : vector<16x128xf32>
    %c0_16 = arith.constant 0 : index
    %c0_17 = arith.constant 0 : index
    %17 = vector.load %arg8[%c0_16, %c0_17] : memref<16x128xf32, #tpu.memory_space<vmem>>, vector<16x128xf32>
    tpu.vector_store %arg8[%c0_16, %c0_17], %16 {strides = array<i32>} : memref<16x128xf32, #tpu.memory_space<vmem>>, vector<16x128xf32>,
    %c0_i32_18 = arith.constant 0 : i32
    %18 = arith.cmpi eq, %arg1, %c0_i32_18 : i32
    %19 = arith.extui %18 : i1 to i32
    %c0_i32_19 = arith.constant 0 : i32
    %20 = arith.cmpi ne, %19, %c0_i32_19 : i32
    scf.if %20 {
      %c0_20 = arith.constant 0 : index
      %c0_21 = arith.constant 0 : index
      %21 = vector.load %arg8[%c0_20, %c0_21] : memref<16x128xf32, #tpu.memory_space<vmem>>, vector<16x128xf32>
      %c0_22 = arith.constant 0 : index
      %c0_23 = arith.constant 0 : index
      %22 = vector.load %arg6[%c0_22, %c0_23] : memref<1x128xf32, #tpu.memory_space<vmem>>, vector<1x128xf32>
      %23 = vector.broadcast %22 : vector<1x128xf32> to vector<16x128xf32>
      %24 = arith.addf %21, %23 : vector<16x128xf32>
      %c0_24 = arith.constant 0 : index
      %c0_25 = arith.constant 0 : index
      %25 = vector.load %arg7[%c0_24, %c0_25] : memref<16x128xf32, #tpu.memory_space<vmem>>, vector<16x128xf32>
      tpu.vector_store %arg7[%c0_24, %c0_25], %24 {strides = array<i32>} : memref<16x128xf32, #tpu.memory_space<vmem>>, vector<16x128xf32>,
    } else {
    }
    return
  }
  func.func @transform_0(%arg0: i32, %arg1: i32) -> (i32, i32) {
    %c0_i32 = arith.constant 0 : i32
    %c0_i32_0 = arith.constant 0 : i32
    return %arg0, %c0_i32 : i32, i32
  }
  func.func @transform_1(%arg0: i32, %arg1: i32) -> (i32, i32) {
    %c0_i32 = arith.constant 0 : i32
    %c0_i32_0 = arith.constant 0 : i32
    return %c0_i32, %arg1 : i32, i32
  }
  func.func @transform_2(%arg0: i32, %arg1: i32) -> (i32, i32) {
    %c0_i32 = arith.constant 0 : i32
    %c0_i32_0 = arith.constant 0 : i32
    return %c0_i32, %arg1 : i32, i32
  }
  func.func @transform_3(%arg0: i32, %arg1: i32) -> (i32, i32) {
    %c0_i32 = arith.constant 0 : i32
    %c0_i32_0 = arith.constant 0 : i32
    return %arg1, %c0_i32 : i32, i32
  }
  func.func @transform_4(%arg0: i32, %arg1: i32) -> (i32, i32) {
    %c0_i32 = arith.constant 0 : i32
    %c0_i32_0 = arith.constant 0 : i32
    %c0_i32_1 = arith.constant 0 : i32
    return %c0_i32, %c0_i32_0 : i32, i32
  }
  func.func @transform_5(%arg0: i32, %arg1: i32) -> (i32, i32) {
    %c0_i32 = arith.constant 0 : i32
    %c0_i32_0 = arith.constant 0 : i32
    return %arg0, %c0_i32 : i32, i32
  }
}

</mosaic_0001>

<bundles_post_ra>
// kernel: positionwise_feedforward.1
= control target key start
LH: loop header
LB: loop body
LE: loop exit
PB: predicated region body
PF: predicated region fallthrough
CT: control target
= control target key end

     0   :  { %s317_s1 = inlined_call_operand.vmem [shape: f32[128,128], index: 1, kind: input, shape index: {}]   ;;  %s318_s3 = inlined_call_operand.vmem [shape: f32[128,128], index: 3, kind: input, shape index: {}]   ;;  %s319_s2 = inlined_call_operand.vmem [shape: f32[1,128], index: 2, kind: input, shape index: {}]   ;;  %s320_s0 = inlined_call_operand.vmem [shape: f32[16,128], index: 0, kind: input, shape index: {}]   ;;  %s321_s4 = inlined_call_operand.vmem [shape: f32[1,128], index: 4, kind: input, shape index: {}]   ;;  %s322_s5 = inlined_call_operand.vmem [shape: f32[16,128], index: 5, kind: output, shape index: {}]  }
   0x1   :  { %v43_v0 = vld [vmem:[%s317_s1 + $0x78] sm:$0xff]  ;;  %v42_v1 = vld [vmem:[%s317_s1 + $0x70] sm:$0xff]  ;;  %v41_v2 = vld [vmem:[%s317_s1 + $0x68] sm:$0xff] }
   0x2   :  { %139 = vmatpush.msra.mxu2 %v43_v0  ;;  %48 = vmatpush.msra.mxu0 %v43_v0  ;;  %v40_v3 = vld [vmem:[%s317_s1 + $0x60] sm:$0xff]  ;;  %v39_v4 = vld [vmem:[%s317_s1 + $0x58] sm:$0xff]  ;;  %v93_v6 = vld [vmem:[%s318_s3 + $0x70] sm:$0xff] }
   0x3   :  { %v94_v5 = vld [vmem:[%s318_s3 + $0x78] sm:$0xff]  ;;  %v38_v7 = vld [vmem:[%s317_s1 + $0x50] sm:$0xff]  ;;  %v92_v8 = vld [vmem:[%s318_s3 + $0x68] sm:$0xff] }
   0x4   :  { %140 = vmatpush.msra.mxu2 %v42_v1  ;;  %49 = vmatpush.msra.mxu0 %v42_v1  ;;  %v37_v9 = vld [vmem:[%s317_s1 + $0x48] sm:$0xff]  ;;  %v91_v10 = vld [vmem:[%s318_s3 + $0x60] sm:$0xff]  ;;  %v90_v12 = vld [vmem:[%s318_s3 + $0x58] sm:$0xff] }
   0x5   :  { %155 = vmatpush.msra.mxu3 %v94_v5  ;;  %95 = vmatpush.msra.mxu1 %v94_v5  ;;  %v36_v11 = vld [vmem:[%s317_s1 + $0x40] sm:$0xff]  ;;  %v35_v13 = vld [vmem:[%s317_s1 + $0x38] sm:$0xff]  ;;  %v89_v14 = vld [vmem:[%s318_s3 + $0x50] sm:$0xff] }
   0x6   :  { %141 = vmatpush.msra.mxu2 %v41_v2  ;;  %50 = vmatpush.msra.mxu0 %v41_v2  ;;  %v34_v15 = vld [vmem:[%s317_s1 + $0x30] sm:$0xff]  ;;  %v88_v16 = vld [vmem:[%s318_s3 + $0x48] sm:$0xff]  ;;  %v87_v18 = vld [vmem:[%s318_s3 + $0x40] sm:$0xff] }
   0x7   :  { %156 = vmatpush.msra.mxu3 %v93_v6  ;;  %96 = vmatpush.msra.mxu1 %v93_v6  ;;  %v33_v17 = vld [vmem:[%s317_s1 + $0x28] sm:$0xff]  ;;  %v32_v19 = vld [vmem:[%s317_s1 + $0x20] sm:$0xff]  ;;  %v86_v20 = vld [vmem:[%s318_s3 + $0x38] sm:$0xff] }
   0x8   :  { %142 = vmatpush.msra.mxu2 %v40_v3  ;;  %51 = vmatpush.msra.mxu0 %v40_v3  ;;  %v31_v21 = vld [vmem:[%s317_s1 + $0x18] sm:$0xff]  ;;  %v85_v22 = vld [vmem:[%s318_s3 + $0x30] sm:$0xff]  ;;  %v84_v24 = vld [vmem:[%s318_s3 + $0x28] sm:$0xff] }
   0x9   :  { %157 = vmatpush.msra.mxu3 %v92_v8  ;;  %97 = vmatpush.msra.mxu1 %v92_v8  ;;  %v30_v23 = vld [vmem:[%s317_s1 + $0x10] sm:$0xff]  ;;  %v29_v25 = vld [vmem:[%s317_s1 + $0x8] sm:$0xff]  ;;  %v83_v26 = vld [vmem:[%s318_s3 + $0x20] sm:$0xff] }
   0xa   :  { %143 = vmatpush.msra.mxu2 %v39_v4  ;;  %52 = vmatpush.msra.mxu0 %v39_v4  ;;  %v28_v27 = vld [vmem:[%s317_s1] sm:$0xff]  ;;  %v27_v28 = vld [vmem:[%s320_s0 + $0x8] sm:$0xff]  ;;  %v82_v30 = vld [vmem:[%s318_s3 + $0x18] sm:$0xff] }
   0xb   :  { %158 = vmatpush.msra.mxu3 %v91_v10  ;;  %98 = vmatpush.msra.mxu1 %v91_v10  ;;  %v26_v29 = vld [vmem:[%s320_s0] sm:$0xff]  ;;  %v81_v31 = vld [vmem:[%s318_s3 + $0x10] sm:$0xff]  ;;  %v80_v32 = vld [vmem:[%s318_s3 + $0x8] sm:$0xff] }
   0xc   :  { %144 = vmatpush.msra.mxu2 %v38_v7  ;;  %53 = vmatpush.msra.mxu0 %v38_v7  ;;  %v79_v33 = vld [vmem:[%s318_s3] sm:$0xff] }
   0xd   :  { %159 = vmatpush.msra.mxu3 %v90_v12  ;;  %99 = vmatpush.msra.mxu1 %v90_v12  ;;  %v171_v34 = vld [vmem:[%s319_s2] ss:$0 sm:$0xff] }
   0xe   :  { %145 = vmatpush.msra.mxu2 %v37_v9  ;;  %54 = vmatpush.msra.mxu0 %v37_v9  ;;  %v172_v41 = vld [vmem:[%s321_s4] ss:$0 sm:$0xff] }
   0xf   :  { %160 = vmatpush.msra.mxu3 %v89_v14  ;;  %100 = vmatpush.msra.mxu1 %v89_v14 }
  0x10   :  { %146 = vmatpush.msra.mxu2 %v36_v11  ;;  %55 = vmatpush.msra.mxu0 %v36_v11 }
  0x11   :  { %161 = vmatpush.msra.mxu3 %v88_v16  ;;  %101 = vmatpush.msra.mxu1 %v88_v16 }
  0x12   :  { %147 = vmatpush.msra.mxu2 %v35_v13  ;;  %56 = vmatpush.msra.mxu0 %v35_v13 }
  0x13   :  { %162 = vmatpush.msra.mxu3 %v87_v18  ;;  %102 = vmatpush.msra.mxu1 %v87_v18 }
  0x14   :  { %148 = vmatpush.msra.mxu2 %v34_v15  ;;  %57 = vmatpush.msra.mxu0 %v34_v15 }
  0x15   :  { %163 = vmatpush.msra.mxu3 %v86_v20  ;;  %103 = vmatpush.msra.mxu1 %v86_v20 }
  0x16   :  { %149 = vmatpush.msra.mxu2 %v33_v17  ;;  %58 = vmatpush.msra.mxu0 %v33_v17 }
  0x17   :  { %164 = vmatpush.msra.mxu3 %v85_v22  ;;  %104 = vmatpush.msra.mxu1 %v85_v22 }
  0x18   :  { %150 = vmatpush.msra.mxu2 %v32_v19  ;;  %59 = vmatpush.msra.mxu0 %v32_v19 }
  0x19   :  { %165 = vmatpush.msra.mxu3 %v84_v24  ;;  %105 = vmatpush.msra.mxu1 %v84_v24 }
  0x1a   :  { %151 = vmatpush.msra.mxu2 %v31_v21  ;;  %60 = vmatpush.msra.mxu0 %v31_v21 }
  0x1b   :  { %166 = vmatpush.msra.mxu3 %v83_v26  ;;  %106 = vmatpush.msra.mxu1 %v83_v26 }
  0x1c   :  { %152 = vmatpush.msra.mxu2 %v30_v23  ;;  %61 = vmatpush.msra.mxu0 %v30_v23 }
  0x1d   :  { %167 = vmatpush.msra.mxu3 %v82_v30  ;;  %107 = vmatpush.msra.mxu1 %v82_v30 }
  0x1e   :  { %153 = vmatpush.msra.mxu2 %v29_v25  ;;  %62 = vmatpush.msra.mxu0 %v29_v25 }
  0x1f   :  { %168 = vmatpush.msra.mxu3 %v81_v31  ;;  %108 = vmatpush.msra.mxu1 %v81_v31 }
  0x20   :  { %154 = vmatpush.msra.mxu2 %v28_v27  ;;  %63 = vmatpush.msra.mxu0 %v28_v27 }
  0x21   :  { %67 = vmatmul.f32.vlgmr.msra.gmra.mxu2 %v27_v28  ;;  %64 = vmatmul.f32.vlgmr.msra.gmra.mxu0 %v26_v29 }
  0x22   :  { %169 = vmatpush.msra.mxu3 %v80_v32  ;;  %109 = vmatpush.msra.mxu1 %v80_v32 }
  0x24   :  { %170 = vmatpush.msra.mxu3 %v79_v33  ;;  %110 = vmatpush.msra.mxu1 %v79_v33 }
  0x9e   :  { %v65_v35 = vpop.f32.mrf.mxu0 }
  0x9f   :  { %v66_v36 = vadd.f32 %v171_v34, %v65_v35 }
  0xa1   :  { %v71_v37 = vmax.f32 %v66_v36, 0.0 }
  0xa3   :  { %111 = vmatmul.f32.vlgmr.msra.gmra.mxu1 %v71_v37 }
  0xa4   :  { %v68_v38 = vpop.f32.mrf.mxu2 }
  0xa5   :  { %v69_v39 = vadd.f32 %v171_v34, %v68_v38 }
  0xa7   :  { %v72_v40 = vmax.f32 %v69_v39, 0.0 }
  0xa9   :  { %114 = vmatmul.f32.vlgmr.msra.gmra.mxu3 %v72_v40 }
 0x120   :  { %v112_v42 = vpop.f32.mrf.mxu1 }
 0x121   :  { %v131_v43 = vadd.f32 %v172_v41, %v112_v42 }
 0x123   :  { %133 = vst [vmem:[%s322_s5] sm:$0xff] %v131_v43 }
 0x12c   :  { %v115_v44 = vpop.f32.mrf.mxu3 }
 0x12d   :  { %v132_v45 = vadd.f32 %v172_v41, %v115_v44 }
 0x12f   :  { %134 = vst [vmem:[%s322_s5 + $0x8] sm:$0xff] %v132_v45 }

</bundles_post_ra>
